<compile_context>
chip_gen: v5e
topology: v5e:2x2
jax: 0.10.0
libtpu: 0.0.40
codegen_flags: <defaults>
</compile_context>

<pallas_src>
import functools

import jax
import jax.numpy as jnp
from jax.experimental import pallas as pl
from jax.experimental.pallas import tpu as pltpu

_CHUNK = 8                                    # words per chunk (one f32 sublane tile)
_NEG = float(jnp.finfo(jnp.float32).min)      # max-identity sentinel (empty spans
                                              # keep this value, matching the reference)


def _span_embedding_kernel(bmin_ref, emax_ref,                       # scalar prefetch (SMEM)
                           words_ref, begin_ref, end_ref, labT_ref, emb_ref,
                           out_ref, acc_ref, *, n_chunks, n_labels):
    b = pl.program_id(0)
    S, TD = acc_ref.shape

    begin = begin_ref[...]                    # (S, 1) int32, spans on sublanes
    end = end_ref[...]                        # (S, 1) int32

    b_min = bmin_ref[b]                       # SMEM scalars for chunk skipping
    e_max = emax_ref[b]

    acc_ref[...] = jnp.full((S, TD), _NEG, jnp.float32)

    @pl.loop(0, n_chunks)
    def _(c):
        chunk_start = c * _CHUNK

        # Skip word chunks that no span in this batch touches.
        @pl.when((chunk_start <= e_max) & (chunk_start + (_CHUNK - 1) >= b_min))
        def _():
            start = pl.multiple_of(chunk_start, _CHUNK)
            chunk = words_ref[pl.ds(start, _CHUNK), :]               # (_CHUNK, TD)
            acc = acc_ref[...]
            for j in range(_CHUNK):                                  # unrolled, VALU-only
                w = chunk_start + j
                m = (begin <= w) & (w <= end)                        # (S, 1)
                acc = jnp.maximum(acc, jnp.where(m, chunk[j:j + 1, :], _NEG))
            acc_ref[...] = acc

    # Label embedding: (S, L) @ (L, TD) with tiny L -> L VPU broadcast-FMAs
    # instead of a per-grid-step MXU matmul.
    emb = emb_ref[...]                        # (L, TD)
    labT = labT_ref[...]                      # (L, S, 1) float32
    lab = jnp.zeros((S, TD), jnp.float32)
    for l in range(n_labels):
        lab = lab + labT[l] * emb[l:l + 1, :]                        # (S,1)*(1,TD)

    out_ref[...] = (acc_ref[...] + lab).astype(out_ref.dtype)


def span_embedding(words_embed, spans_begin, spans_end, spans_label,
                   label_embedding, *, d_tile=512):
    B, W, D = words_embed.shape
    _, S, L = spans_label.shape

    # Lane-dense feature dim, optionally tiled to bound VMEM for large D.
    Dp = ((D + 127) // 128) * 128
    if Dp <= d_tile:
        TD = Dp
    else:
        TD = d_tile
        Dp = ((Dp + TD - 1) // TD) * TD       # make TD divide Dp
    n_d = Dp // TD

    Wp = ((W + _CHUNK - 1) // _CHUNK) * _CHUNK
    n_chunks = Wp // _CHUNK

    words_p = words_embed.astype(jnp.float32)
    if Dp != D:
        words_p = jnp.pad(words_p, ((0, 0), (0, 0), (0, Dp - D)))
    if Wp != W:
        # extra word rows padded with the max-identity so they can never win
        words_p = jnp.pad(words_p, ((0, 0), (0, Wp - W), (0, 0)),
                          constant_values=_NEG)

    emb_p = label_embedding.astype(jnp.float32)
    if Dp != D:
        emb_p = jnp.pad(emb_p, ((0, 0), (0, Dp - D)))

    begin3 = spans_begin.astype(jnp.int32)[..., None]                # (B, S, 1)
    end3 = spans_end.astype(jnp.int32)[..., None]                    # (B, S, 1)
    labT = jnp.transpose(spans_label.astype(jnp.float32),
                         (0, 2, 1))[..., None]                       # (B, L, S, 1)

    # Per-batch span bounds for chunk skipping (prefetched to SMEM).
    b_min = jnp.min(spans_begin, axis=1).astype(jnp.int32)           # (B,)
    e_max = jnp.max(spans_end, axis=1).astype(jnp.int32)             # (B,)

    kernel = functools.partial(_span_embedding_kernel,
                               n_chunks=n_chunks, n_labels=L)

    out_p = pl.pallas_call(
        kernel,
        out_shape=jax.ShapeDtypeStruct((B, S, Dp), jnp.float32),
        grid_spec=pltpu.PrefetchScalarGridSpec(
            num_scalar_prefetch=2,
            grid=(B, n_d),
            in_specs=[
                pl.BlockSpec((None, Wp, TD), lambda b, d, bm, em: (b, 0, d)),     # words
                pl.BlockSpec((None, S, 1), lambda b, d, bm, em: (b, 0, 0)),       # begin
                pl.BlockSpec((None, S, 1), lambda b, d, bm, em: (b, 0, 0)),       # end
                pl.BlockSpec((None, L, S, 1), lambda b, d, bm, em: (b, 0, 0, 0)), # labels^T
                pl.BlockSpec((L, TD), lambda b, d, bm, em: (0, d)),               # emb table
            ],
            out_specs=pl.BlockSpec((None, S, TD), lambda b, d, bm, em: (b, 0, d)),
            scratch_shapes=[pltpu.VMEM((S, TD), jnp.float32)],
        ),
        compiler_params=pltpu.CompilerParams(
            dimension_semantics=("parallel", "parallel")),
    )(b_min, e_max, words_p, begin3, end3, labT, emb_p)

    return out_p[:, :, :D]


def span_embedding_ref(words_embed, spans_begin, spans_end, spans_label,
                       label_embedding):
    """Pure-JAX reference matching the PyTorch forward (eval mode)."""
    B, W, D = words_embed.shape
    w_idx = jnp.arange(W)[None, None, :]                             # (1, 1, W)
    mask = (w_idx >= spans_begin[:, :, None]) & (w_idx <= spans_end[:, :, None])
    masked = jnp.where(mask[..., None], words_embed[:, None, :, :], _NEG)
    pooled = jnp.max(masked, axis=2)                                 # (B, S, D)
    label_embeds = jnp.einsum('ld,bsl->bsd', label_embedding,
                              spans_label.astype(jnp.float32))
    return pooled + label_embeds


if __name__ == "__main__":
    B, W, D = 2, 16, 32      # n_samples, n_words, input_size
    S, L = 8, 4              # n_spans, n_labels

    key = jax.random.PRNGKey(0)
    k_words, k_emb, k_begin, k_len, k_label = jax.random.split(key, 5)

    words_embed = jax.random.normal(k_words, (B, W, D), dtype=jnp.float32)

    # deterministic parameter init (synthetic, like nn.Embedding weight)
    label_embedding = jax.random.normal(k_emb, (L, D), dtype=jnp.float32) * 0.02

    spans_begin = jax.random.randint(k_begin, (B, S), 0, W - 4).astype(jnp.int32)
    span_len = jax.random.randint(k_len, (B, S), 0, 4).astype(jnp.int32)
    spans_end = jnp.minimum(spans_begin + span_len, W - 1).astype(jnp.int32)

    # one-hot span labels (module does spans_label.float() before the einsum)
    label_ids = jax.random.randint(k_label, (B, S), 0, L)
    spans_label = jax.nn.one_hot(label_ids, L, dtype=jnp.float32)

    out = span_embedding(words_embed, spans_begin, spans_end, spans_label,
                         label_embedding)
    out = jax.block_until_ready(out)

    ref = span_embedding_ref(words_embed, spans_begin, spans_end, spans_label,
                             label_embedding)
    assert out.shape == (B, S, D)
    assert jnp.allclose(out, ref, atol=1e-5, rtol=1e-5)

    print("KERNEL_OK")
</pallas_src>

<mosaic_0001>
module attributes {stable_mosaic.version = 11 : i64} {
  func.func @_span_embedding_kernel(%arg0: i32, %arg1: i32, %arg2: memref<2xi32, #tpu.memory_space<smem>>, %arg3: memref<2xi32, #tpu.memory_space<smem>>, %arg4: memref<1x16x128xf32, #tpu.memory_space<vmem>>, %arg5: memref<1x8x1xi32, #tpu.memory_space<vmem>>, %arg6: memref<1x8x1xi32, #tpu.memory_space<vmem>>, %arg7: memref<1x4x8x1xf32, #tpu.memory_space<vmem>>, %arg8: memref<4x128xf32, #tpu.memory_space<vmem>>, %arg9: memref<1x8x128xf32, #tpu.memory_space<vmem>>, %arg10: memref<8x128xf32, #tpu.memory_space<vmem>>) attributes {dimension_semantics = [#tpu.dimension_semantics<parallel>, #tpu.dimension_semantics<parallel>], iteration_bounds = array<i64: 2, 1>, scalar_prefetch = 2 : i64, scratch_operands = 1 : i64, tpu.core_type = #tpu.core_type<tc>, window_params = [{transform_indices = @transform_0, window_bounds = array<i64: 1, 16, 128>}, {transform_indices = @transform_1, window_bounds = array<i64: 1, 8, 1>}, {transform_indices = @transform_2, window_bounds = array<i64: 1, 8, 1>}, {transform_indices = @transform_3, window_bounds = array<i64: 1, 4, 8, 1>}, {transform_indices = @transform_4, window_bounds = array<i64: 4, 128>}, {transform_indices = @transform_5, window_bounds = array<i64: 1, 8, 128>}]} {
    %c0 = arith.constant 0 : index
    %c0_0 = arith.constant 0 : index
    %c0_1 = arith.constant 0 : index
    %0 = vector.load %arg5[%c0, %c0_0, %c0_1] : memref<1x8x1xi32, #tpu.memory_space<vmem>>, vector<1x8x1xi32>
    %1 = vector.shape_cast %0 : vector<1x8x1xi32> to vector<8x1xi32>
    %c0_2 = arith.constant 0 : index
    %c0_3 = arith.constant 0 : index
    %c0_4 = arith.constant 0 : index
    %2 = vector.load %arg6[%c0_2, %c0_3, %c0_4] : memref<1x8x1xi32, #tpu.memory_space<vmem>>, vector<1x8x1xi32>
    %3 = vector.shape_cast %2 : vector<1x8x1xi32> to vector<8x1xi32>
    %4 = arith.index_cast %arg0 : i32 to index
    %5 = memref.load %arg2[%4] : memref<2xi32, #tpu.memory_space<smem>>
    %6 = arith.index_cast %arg0 : i32 to index
    %7 = memref.load %arg3[%6] : memref<2xi32, #tpu.memory_space<smem>>
    %cst = arith.constant -3.40282347E+38 : f32
    %8 = vector.broadcast %cst : f32 to vector<8x128xf32>
    %c0_5 = arith.constant 0 : index
    %c0_6 = arith.constant 0 : index
    %9 = vector.load %arg10[%c0_5, %c0_6] : memref<8x128xf32, #tpu.memory_space<vmem>>, vector<8x128xf32>
    tpu.vector_store %arg10[%c0_5, %c0_6], %8 {strides = array<i32>} : memref<8x128xf32, #tpu.memory_space<vmem>>, vector<8x128xf32>,
    %c0_i32 = arith.constant 0 : i32
    %c2_i32 = arith.constant 2 : i32
    %10 = arith.addi %c0_i32, %c2_i32 : i32
    %c1_i32 = arith.constant 1 : i32
    scf.for %arg11 = %c0_i32 to %10 step %c1_i32  : i32 {
      %c1_i32_20 = arith.constant 1 : i32
      %48 = arith.muli %arg11, %c1_i32_20 : i32
      %c0_i32_21 = arith.constant 0 : i32
      %49 = arith.addi %c0_i32_21, %48 : i32
      %c8_i32 = arith.constant 8 : i32
      %50 = arith.muli %49, %c8_i32 : i32
      %51 = arith.cmpi sle, %50, %7 : i32
      %c7_i32 = arith.constant 7 : i32
      %52 = arith.addi %50, %c7_i32 : i32
      %53 = arith.cmpi sge, %52, %5 : i32
      %54 = arith.andi %51, %53 : i1
      %55 = arith.extui %54 : i1 to i32
      %c0_i32_22 = arith.constant 0 : i32
      %56 = arith.cmpi ne, %55, %c0_i32_22 : i32
      scf.if %56 {
        %57 = tpu.assume_multiple %50, 8 : i32
        %c0_23 = arith.constant 0 : index
        %58 = arith.index_cast %57 : i32 to index
        %c0_24 = arith.constant 0 : index
        %59 = vector.load %arg4[%c0_23, %58, %c0_24] : memref<1x16x128xf32, #tpu.memory_space<vmem>>, vector<1x8x128xf32>
        %60 = vector.shape_cast %59 : vector<1x8x128xf32> to vector<8x128xf32>
        %c0_25 = arith.constant 0 : index
        %c0_26 = arith.constant 0 : index
        %61 = vector.load %arg10[%c0_25, %c0_26] : memref<8x128xf32, #tpu.memory_space<vmem>>, vector<8x128xf32>
        %c0_i32_27 = arith.constant 0 : i32
        %62 = arith.addi %50, %c0_i32_27 : i32
        %63 = vector.broadcast %62 : i32 to vector<8x1xi32>
        %64 = arith.cmpi sle, %1, %63 : vector<8x1xi32>
        %65 = vector.broadcast %62 : i32 to vector<8x1xi32>
        %66 = arith.cmpi sle, %65, %3 : vector<8x1xi32>
        %67 = arith.andi %64, %66 : vector<8x1xi1>
        %68 = vector.extract_strided_slice %60 {offsets = [0, 0], sizes = [1, 128], strides = [1, 1]} : vector<8x128xf32> to vector<1x128xf32>
        %cst_28 = arith.constant -3.40282347E+38 : f32
        %69 = vector.shape_cast %67 : vector<8x1xi1> to vector<8x1xi1>
        %70 = vector.broadcast %69 : vector<8x1xi1> to vector<8x128xi1>
        %71 = vector.shape_cast %68 : vector<1x128xf32> to vector<1x128xf32>
        %72 = vector.broadcast %71 : vector<1x128xf32> to vector<8x128xf32>
        %73 = vector.broadcast %cst_28 : f32 to vector<8x128xf32>
        %74 = arith.select %70, %72, %73 : vector<8x128xi1>, vector<8x128xf32>
        %75 = arith.maximumf %61, %74 : vector<8x128xf32>
        %c1_i32_29 = arith.constant 1 : i32
        %76 = arith.addi %50, %c1_i32_29 : i32
        %77 = vector.broadcast %76 : i32 to vector<8x1xi32>
        %78 = arith.cmpi sle, %1, %77 : vector<8x1xi32>
        %79 = vector.broadcast %76 : i32 to vector<8x1xi32>
        %80 = arith.cmpi sle, %79, %3 : vector<8x1xi32>
        %81 = arith.andi %78, %80 : vector<8x1xi1>
        %82 = vector.extract_strided_slice %60 {offsets = [1, 0], sizes = [1, 128], strides = [1, 1]} : vector<8x128xf32> to vector<1x128xf32>
        %cst_30 = arith.constant -3.40282347E+38 : f32
        %83 = vector.shape_cast %81 : vector<8x1xi1> to vector<8x1xi1>
        %84 = vector.broadcast %83 : vector<8x1xi1> to vector<8x128xi1>
        %85 = vector.shape_cast %82 : vector<1x128xf32> to vector<1x128xf32>
        %86 = vector.broadcast %85 : vector<1x128xf32> to vector<8x128xf32>
        %87 = vector.broadcast %cst_30 : f32 to vector<8x128xf32>
        %88 = arith.select %84, %86, %87 : vector<8x128xi1>, vector<8x128xf32>
        %89 = arith.maximumf %75, %88 : vector<8x128xf32>
        %c2_i32_31 = arith.constant 2 : i32
        %90 = arith.addi %50, %c2_i32_31 : i32
        %91 = vector.broadcast %90 : i32 to vector<8x1xi32>
        %92 = arith.cmpi sle, %1, %91 : vector<8x1xi32>
        %93 = vector.broadcast %90 : i32 to vector<8x1xi32>
        %94 = arith.cmpi sle, %93, %3 : vector<8x1xi32>
        %95 = arith.andi %92, %94 : vector<8x1xi1>
        %96 = vector.extract_strided_slice %60 {offsets = [2, 0], sizes = [1, 128], strides = [1, 1]} : vector<8x128xf32> to vector<1x128xf32>
        %cst_32 = arith.constant -3.40282347E+38 : f32
        %97 = vector.shape_cast %95 : vector<8x1xi1> to vector<8x1xi1>
        %98 = vector.broadcast %97 : vector<8x1xi1> to vector<8x128xi1>
        %99 = vector.shape_cast %96 : vector<1x128xf32> to vector<1x128xf32>
        %100 = vector.broadcast %99 : vector<1x128xf32> to vector<8x128xf32>
        %101 = vector.broadcast %cst_32 : f32 to vector<8x128xf32>
        %102 = arith.select %98, %100, %101 : vector<8x128xi1>, vector<8x128xf32>
        %103 = arith.maximumf %89, %102 : vector<8x128xf32>
        %c3_i32 = arith.constant 3 : i32
        %104 = arith.addi %50, %c3_i32 : i32
        %105 = vector.broadcast %104 : i32 to vector<8x1xi32>
        %106 = arith.cmpi sle, %1, %105 : vector<8x1xi32>
        %107 = vector.broadcast %104 : i32 to vector<8x1xi32>
        %108 = arith.cmpi sle, %107, %3 : vector<8x1xi32>
        %109 = arith.andi %106, %108 : vector<8x1xi1>
        %110 = vector.extract_strided_slice %60 {offsets = [3, 0], sizes = [1, 128], strides = [1, 1]} : vector<8x128xf32> to vector<1x128xf32>
        %cst_33 = arith.constant -3.40282347E+38 : f32
        %111 = vector.shape_cast %109 : vector<8x1xi1> to vector<8x1xi1>
        %112 = vector.broadcast %111 : vector<8x1xi1> to vector<8x128xi1>
        %113 = vector.shape_cast %110 : vector<1x128xf32> to vector<1x128xf32>
        %114 = vector.broadcast %113 : vector<1x128xf32> to vector<8x128xf32>
        %115 = vector.broadcast %cst_33 : f32 to vector<8x128xf32>
        %116 = arith.select %112, %114, %115 : vector<8x128xi1>, vector<8x128xf32>
        %117 = arith.maximumf %103, %116 : vector<8x128xf32>
        %c4_i32 = arith.constant 4 : i32
        %118 = arith.addi %50, %c4_i32 : i32
        %119 = vector.broadcast %118 : i32 to vector<8x1xi32>
        %120 = arith.cmpi sle, %1, %119 : vector<8x1xi32>
        %121 = vector.broadcast %118 : i32 to vector<8x1xi32>
        %122 = arith.cmpi sle, %121, %3 : vector<8x1xi32>
        %123 = arith.andi %120, %122 : vector<8x1xi1>
        %124 = vector.extract_strided_slice %60 {offsets = [4, 0], sizes = [1, 128], strides = [1, 1]} : vector<8x128xf32> to vector<1x128xf32>
        %cst_34 = arith.constant -3.40282347E+38 : f32
        %125 = vector.shape_cast %123 : vector<8x1xi1> to vector<8x1xi1>
        %126 = vector.broadcast %125 : vector<8x1xi1> to vector<8x128xi1>
        %127 = vector.shape_cast %124 : vector<1x128xf32> to vector<1x128xf32>
        %128 = vector.broadcast %127 : vector<1x128xf32> to vector<8x128xf32>
        %129 = vector.broadcast %cst_34 : f32 to vector<8x128xf32>
        %130 = arith.select %126, %128, %129 : vector<8x128xi1>, vector<8x128xf32>
        %131 = arith.maximumf %117, %130 : vector<8x128xf32>
        %c5_i32 = arith.constant 5 : i32
        %132 = arith.addi %50, %c5_i32 : i32
        %133 = vector.broadcast %132 : i32 to vector<8x1xi32>
        %134 = arith.cmpi sle, %1, %133 : vector<8x1xi32>
        %135 = vector.broadcast %132 : i32 to vector<8x1xi32>
        %136 = arith.cmpi sle, %135, %3 : vector<8x1xi32>
        %137 = arith.andi %134, %136 : vector<8x1xi1>
        %138 = vector.extract_strided_slice %60 {offsets = [5, 0], sizes = [1, 128], strides = [1, 1]} : vector<8x128xf32> to vector<1x128xf32>
        %cst_35 = arith.constant -3.40282347E+38 : f32
        %139 = vector.shape_cast %137 : vector<8x1xi1> to vector<8x1xi1>
        %140 = vector.broadcast %139 : vector<8x1xi1> to vector<8x128xi1>
        %141 = vector.shape_cast %138 : vector<1x128xf32> to vector<1x128xf32>
        %142 = vector.broadcast %141 : vector<1x128xf32> to vector<8x128xf32>
        %143 = vector.broadcast %cst_35 : f32 to vector<8x128xf32>
        %144 = arith.select %140, %142, %143 : vector<8x128xi1>, vector<8x128xf32>
        %145 = arith.maximumf %131, %144 : vector<8x128xf32>
        %c6_i32 = arith.constant 6 : i32
        %146 = arith.addi %50, %c6_i32 : i32
        %147 = vector.broadcast %146 : i32 to vector<8x1xi32>
        %148 = arith.cmpi sle, %1, %147 : vector<8x1xi32>
        %149 = vector.broadcast %146 : i32 to vector<8x1xi32>
        %150 = arith.cmpi sle, %149, %3 : vector<8x1xi32>
        %151 = arith.andi %148, %150 : vector<8x1xi1>
        %152 = vector.extract_strided_slice %60 {offsets = [6, 0], sizes = [1, 128], strides = [1, 1]} : vector<8x128xf32> to vector<1x128xf32>
        %cst_36 = arith.constant -3.40282347E+38 : f32
        %153 = vector.shape_cast %151 : vector<8x1xi1> to vector<8x1xi1>
        %154 = vector.broadcast %153 : vector<8x1xi1> to vector<8x128xi1>
        %155 = vector.shape_cast %152 : vector<1x128xf32> to vector<1x128xf32>
        %156 = vector.broadcast %155 : vector<1x128xf32> to vector<8x128xf32>
        %157 = vector.broadcast %cst_36 : f32 to vector<8x128xf32>
        %158 = arith.select %154, %156, %157 : vector<8x128xi1>, vector<8x128xf32>
        %159 = arith.maximumf %145, %158 : vector<8x128xf32>
        %c7_i32_37 = arith.constant 7 : i32
        %160 = arith.addi %50, %c7_i32_37 : i32
        %161 = vector.broadcast %160 : i32 to vector<8x1xi32>
        %162 = arith.cmpi sle, %1, %161 : vector<8x1xi32>
        %163 = vector.broadcast %160 : i32 to vector<8x1xi32>
        %164 = arith.cmpi sle, %163, %3 : vector<8x1xi32>
        %165 = arith.andi %162, %164 : vector<8x1xi1>
        %166 = vector.extract_strided_slice %60 {offsets = [7, 0], sizes = [1, 128], strides = [1, 1]} : vector<8x128xf32> to vector<1x128xf32>
        %cst_38 = arith.constant -3.40282347E+38 : f32
        %167 = vector.shape_cast %165 : vector<8x1xi1> to vector<8x1xi1>
        %168 = vector.broadcast %167 : vector<8x1xi1> to vector<8x128xi1>
        %169 = vector.shape_cast %166 : vector<1x128xf32> to vector<1x128xf32>
        %170 = vector.broadcast %169 : vector<1x128xf32> to vector<8x128xf32>
        %171 = vector.broadcast %cst_38 : f32 to vector<8x128xf32>
        %172 = arith.select %168, %170, %171 : vector<8x128xi1>, vector<8x128xf32>
        %173 = arith.maximumf %159, %172 : vector<8x128xf32>
        %c0_39 = arith.constant 0 : index
        %c0_40 = arith.constant 0 : index
        %174 = vector.load %arg10[%c0_39, %c0_40] : memref<8x128xf32, #tpu.memory_space<vmem>>, vector<8x128xf32>
        tpu.vector_store %arg10[%c0_39, %c0_40], %173 {strides = array<i32>} : memref<8x128xf32, #tpu.memory_space<vmem>>, vector<8x128xf32>,
      } else {
      }
    }
    %c2_i32_7 = arith.constant 2 : i32
    %c0_8 = arith.constant 0 : index
    %c0_9 = arith.constant 0 : index
    %11 = vector.load %arg8[%c0_8, %c0_9] : memref<4x128xf32, #tpu.memory_space<vmem>>, vector<4x128xf32>
    %c0_10 = arith.constant 0 : index
    %c0_11 = arith.constant 0 : index
    %c0_12 = arith.constant 0 : index
    %c0_13 = arith.constant 0 : index
    %12 = vector.load %arg7[%c0_10, %c0_11, %c0_12, %c0_13] : memref<1x4x8x1xf32, #tpu.memory_space<vmem>>, vector<1x4x8x1xf32>
    %13 = vector.shape_cast %12 : vector<1x4x8x1xf32> to vector<4x8x1xf32>
    %cst_14 = arith.constant 0.000000e+00 : f32
    %14 = vector.broadcast %cst_14 : f32 to vector<8x128xf32>
    %15 = vector.extract_strided_slice %13 {offsets = [0, 0, 0], sizes = [1, 8, 1], strides = [1, 1, 1]} : vector<4x8x1xf32> to vector<1x8x1xf32>
    %16 = vector.shape_cast %15 : vector<1x8x1xf32> to vector<8x1xf32>
    %17 = vector.extract_strided_slice %11 {offsets = [0, 0], sizes = [1, 128], strides = [1, 1]} : vector<4x128xf32> to vector<1x128xf32>
    %18 = vector.broadcast %16 : vector<8x1xf32> to vector<8x128xf32>
    %19 = vector.broadcast %17 : vector<1x128xf32> to vector<8x128xf32>
    %20 = arith.mulf %18, %19 : vector<8x128xf32>
    %21 = arith.addf %14, %20 : vector<8x128xf32>
    %22 = vector.extract_strided_slice %13 {offsets = [1, 0, 0], sizes = [1, 8, 1], strides = [1, 1, 1]} : vector<4x8x1xf32> to vector<1x8x1xf32>
    %23 = vector.shape_cast %22 : vector<1x8x1xf32> to vector<8x1xf32>
    %24 = vector.extract_strided_slice %11 {offsets = [1, 0], sizes = [1, 128], strides = [1, 1]} : vector<4x128xf32> to vector<1x128xf32>
    %25 = vector.broadcast %23 : vector<8x1xf32> to vector<8x128xf32>
    %26 = vector.broadcast %24 : vector<1x128xf32> to vector<8x128xf32>
    %27 = arith.mulf %25, %26 : vector<8x128xf32>
    %28 = arith.addf %21, %27 : vector<8x128xf32>
    %29 = vector.extract_strided_slice %13 {offsets = [2, 0, 0], sizes = [1, 8, 1], strides = [1, 1, 1]} : vector<4x8x1xf32> to vector<1x8x1xf32>
    %30 = vector.shape_cast %29 : vector<1x8x1xf32> to vector<8x1xf32>
    %31 = vector.extract_strided_slice %11 {offsets = [2, 0], sizes = [1, 128], strides = [1, 1]} : vector<4x128xf32> to vector<1x128xf32>
    %32 = vector.broadcast %30 : vector<8x1xf32> to vector<8x128xf32>
    %33 = vector.broadcast %31 : vector<1x128xf32> to vector<8x128xf32>
    %34 = arith.mulf %32, %33 : vector<8x128xf32>
    %35 = arith.addf %28, %34 : vector<8x128xf32>
    %36 = vector.extract_strided_slice %13 {offsets = [3, 0, 0], sizes = [1, 8, 1], strides = [1, 1, 1]} : vector<4x8x1xf32> to vector<1x8x1xf32>
    %37 = vector.shape_cast %36 : vector<1x8x1xf32> to vector<8x1xf32>
    %38 = vector.extract_strided_slice %11 {offsets = [3, 0], sizes = [1, 128], strides = [1, 1]} : vector<4x128xf32> to vector<1x128xf32>
    %39 = vector.broadcast %37 : vector<8x1xf32> to vector<8x128xf32>
    %40 = vector.broadcast %38 : vector<1x128xf32> to vector<8x128xf32>
    %41 = arith.mulf %39, %40 : vector<8x128xf32>
    %42 = arith.addf %35, %41 : vector<8x128xf32>
    %c0_15 = arith.constant 0 : index
    %c0_16 = arith.constant 0 : index
    %43 = vector.load %arg10[%c0_15, %c0_16] : memref<8x128xf32, #tpu.memory_space<vmem>>, vector<8x128xf32>
    %44 = arith.addf %43, %42 : vector<8x128xf32>
    %c0_17 = arith.constant 0 : index
    %c0_18 = arith.constant 0 : index
    %c0_19 = arith.constant 0 : index
    %45 = vector.load %arg9[%c0_17, %c0_18, %c0_19] : memref<1x8x128xf32, #tpu.memory_space<vmem>>, vector<1x8x128xf32>
    %46 = vector.shape_cast %45 : vector<1x8x128xf32> to vector<8x128xf32>
    %47 = vector.shape_cast %44 : vector<8x128xf32> to vector<1x8x128xf32>
    tpu.vector_store %arg9[%c0_17, %c0_18, %c0_19], %47 {strides = array<i32>} : memref<1x8x128xf32, #tpu.memory_space<vmem>>, vector<1x8x128xf32>,
    return
  }
  func.func @transform_0(%arg0: i32, %arg1: i32, %arg2: memref<2xi32, #tpu.memory_space<smem>>, %arg3: memref<2xi32, #tpu.memory_space<smem>>) -> (i32, i32, i32) {
    %c0_i32 = arith.constant 0 : i32
    %c0_i32_0 = arith.constant 0 : i32
    return %arg0, %c0_i32, %arg1 : i32, i32, i32
  }
  func.func @transform_1(%arg0: i32, %arg1: i32, %arg2: memref<2xi32, #tpu.memory_space<smem>>, %arg3: memref<2xi32, #tpu.memory_space<smem>>) -> (i32, i32, i32) {
    %c0_i32 = arith.constant 0 : i32
    %c0_i32_0 = arith.constant 0 : i32
    %c0_i32_1 = arith.constant 0 : i32
    return %arg0, %c0_i32, %c0_i32_0 : i32, i32, i32
  }
  func.func @transform_2(%arg0: i32, %arg1: i32, %arg2: memref<2xi32, #tpu.memory_space<smem>>, %arg3: memref<2xi32, #tpu.memory_space<smem>>) -> (i32, i32, i32) {
    %c0_i32 = arith.constant 0 : i32
    %c0_i32_0 = arith.constant 0 : i32
    %c0_i32_1 = arith.constant 0 : i32
    return %arg0, %c0_i32, %c0_i32_0 : i32, i32, i32
  }
  func.func @transform_3(%arg0: i32, %arg1: i32, %arg2: memref<2xi32, #tpu.memory_space<smem>>, %arg3: memref<2xi32, #tpu.memory_space<smem>>) -> (i32, i32, i32, i32) {
    %c0_i32 = arith.constant 0 : i32
    %c0_i32_0 = arith.constant 0 : i32
    %c0_i32_1 = arith.constant 0 : i32
    %c0_i32_2 = arith.constant 0 : i32
    return %arg0, %c0_i32, %c0_i32_0, %c0_i32_1 : i32, i32, i32, i32
  }
  func.func @transform_4(%arg0: i32, %arg1: i32, %arg2: memref<2xi32, #tpu.memory_space<smem>>, %arg3: memref<2xi32, #tpu.memory_space<smem>>) -> (i32, i32) {
    %c0_i32 = arith.constant 0 : i32
    %c0_i32_0 = arith.constant 0 : i32
    return %c0_i32, %arg1 : i32, i32
  }
  func.func @transform_5(%arg0: i32, %arg1: i32, %arg2: memref<2xi32, #tpu.memory_space<smem>>, %arg3: memref<2xi32, #tpu.memory_space<smem>>) -> (i32, i32, i32) {
    %c0_i32 = arith.constant 0 : i32
    %c0_i32_0 = arith.constant 0 : i32
    return %arg0, %c0_i32, %arg1 : i32, i32, i32
  }
}

</mosaic_0001>

<bundles_post_ra>
// kernel: tpu_custom_call.1
= control target key start
LH: loop header
LB: loop body
LE: loop exit
PB: predicated region body
PF: predicated region fallthrough
CT: control target
= control target key end

     0   :  { %s855_s30 = smov [#allocation4]   ;;  %s856_s8 = smov [#allocation5]   ;;  %s1088_s0 = inlined_call_operand.vmem [shape: s32[2], index: 0, kind: input, shape index: {}]   ;;  %s1089_s2 = inlined_call_operand.vmem [shape: f32[2,16,128], index: 2, kind: input, shape index: {}]   ;;  %s1090_s3 = inlined_call_operand.vmem [shape: s32[2,8,1], index: 3, kind: input, shape index: {}]   ;;  %s1091_s4 = inlined_call_operand.vmem [shape: s32[2,8,1], index: 4, kind: input, shape index: {}]   ;;  %s1092_s5 = inlined_call_operand.vmem [shape: f32[2,4,8,1], index: 5, kind: input, shape index: {}]   ;;  %s1093_s6 = inlined_call_operand.vmem [shape: f32[4,128], index: 6, kind: input, shape index: {}]   ;;  %s1094_s7 = inlined_call_operand.hbm [shape: f32[2,8,128], index: 7, kind: output, shape index: {}]   ;;  %s1095_s1 = inlined_call_operand.vmem [shape: s32[2], index: 1, kind: input, shape index: {}]  }
   0x1   :  { %s13_s26 = sshll.u32 %s1088_s0, 4  ;;  %s18_s29 = sshll.u32 %s1095_s1, 4  ;;  %s14_s26 = int_to_ptr.vmem [resolvable:$true] %s13_s26  ;;  %s19_s29 = int_to_ptr.vmem [resolvable:$true] %s18_s29 }
   0x2   :  { %16 = dma.vmem_to_smem %s14_s26, 16, %s855_s30, [#allocation3] }
   0x3   :  { %21 = dma.vmem_to_smem %s19_s29, 16, %s856_s8, [#allocation3] }
   0x4   :  { %821 = dma.done.wait [#allocation3], 32 }
   0x5   :  { %822 = vsyncadd [#allocation3], 4294967264 }
   0x6   :  { %24 = sfence }
   0x7   :  { %25 = vsyncpa [#allocation7], 0 }
   0x8   :  { %27 = vsyncpa [#allocation7 + $0x1], 0  ;;  %s906_s9 = smov 0   ;;  %s908_s10 = smov 0  }
   0x9   :  { %s910_s0 = smov 0   ;;  %s912_s11 = smov 0  }
   0xa   :  { %s914_s1 = smov 0   ;;  %s916_s12 = smov 0  }
   0xb LB: > { %1100 = sst [smem:[#allocation10_spill]] %s837_s0  ;;  %s648_s13 = sadd.s32 4294967295, %s849_s12   ;;  %s849_s12 = sphi %s916_s12, %s33_s12   ;;  %s845_s1 = sphi %s914_s1, %s1110_s1   ;;  %s841_s11 = sphi %s912_s11, %s1109_s11   ;;  %s837_s0 = sphi %s910_s0, %s1108_s0   ;;  %s833_s10 = sphi %s908_s10, %s1112_s10   ;;  %s829_s9 = sphi %s906_s9, %s1111_s9  }
   0xc   : > { %1101 = sst [smem:[#allocation11_spill]] %s845_s1  ;;  %s649_s14 = sadd.s32 4294967294, %s849_s12  }
   0xd   : > { %s45_s15 = sadd.s32 1, %s845_s1  ;;  %s186_s16 = sadd.s32 1, %s837_s0 }
   0xe   : > { %p47_p0 = scmp.ge.s32.totalorder %s45_s15, 2  ;;  %p196_p1 = scmp.ne.s32.totalorder %s837_s0, %s833_s10 }
   0xf   : > { %p197_p2 = scmp.eq.s32.totalorder %s648_s13, 1  ;;  %p202_p3 = scmp.ne.s32.totalorder %s833_s10, %s829_s9 }
  0x10   : > { %s1114_s15 = smov (%p47_p0, %s45_s15), 0  ;;  %p203_p5 = scmp.eq.s32.totalorder %s649_s14, 1 }
  0x11   : > { %1102 = sst [smem:[#allocation12_spill]] %s1114_s15  ;;  %p946_p4 = por %p197_p2, %p196_p1 }
  0x12   : > { %s181_s18 = ssub.s32 %s845_s1, %s1114_s15  ;;  %p653_p6 = scmp.ge.s32.totalorder %s849_s12, 1 }
  0x13   : > { %p184_p7 = scmp.eq.s32.totalorder %s181_s18, 0  ;;  %p953_p8 = por %p203_p5, %p202_p3 }
  0x14   : > { %p261_p9 = scmp.lt.s32.totalorder %s849_s12, 3 }
  0x15   : > { %s959_s20 = scalar_select %p184_p7, %s837_s0, %s186_s16  }
  0x16   : > { %p262_p10 = pnand %p653_p6, %p261_p9 }
  0x17   : > { %1105 = sst [smem:[#allocation13_spill]] %s959_s20  ;;  %s1096_s21 = sand.u32 (!%p262_p10), 1, %s833_s10  }
  0x18   : > { %265 = sbr.rel (%p262_p10) target bundleno = 330 (0x14a), region = 40  ;;  %p309_p11 = scmp.lt.s32.totalorder (!%p262_p10), %s841_s11, 1 }
  0x19   : > { %s965_s22 = sshll.u32 (!%p262_p10), %s1096_s21, 3  ;;  %s968_s23 = sld [smem:[#allocation4 + %s841_s11]] (!%p262_p10) }
  0x1a   : > { %s971_s24 = sld [smem:[#allocation5 + %s841_s11]] (!%p262_p10)  ;;  %s995_s28 = smov (!%p262_p10), 0  }
  0x1d   : > { %v857_v0 = vmov -3.4028235e+38   ;;  %s310_s25 = scalar_select %p309_p11, %s841_s11, 1 }
  0x1e   : > { %338 = vst [vmem:[#allocation2] sm:$0xff] %v857_v0 }
  0x1f   : > { %s666_s26 = sshll.u32 %s310_s25, 4  ;;  %s657_s27 = sshll.u32 %s310_s25, 3 }
  0x20   : > { %s977_s30 = scalar_lea.vmem %s1089_s2, %s666_s26  ;;  %s320_s14 = scalar_lea.vmem %s1090_s3, %s657_s27 }
  0x21   : > { %s324_s21 = scalar_lea.vmem %s1091_s4, %s657_s27  ;;  %s667_s15 = sshll.u32 %s310_s25, 5  ;;  %v985_v1 = vld [vmem:[%s320_s14] sm:$0xff] }
  0x22   : > { %s990_s0 = scalar_lea.vmem %s1092_s5, %s667_s15  ;;  %v992_v2 = vld [vmem:[%s324_s21] sm:$0xff]  ;;  %s308_s26 = scalar_lea.vmem [#allocation6], %s965_s22 }
  0x23 LB: >> { %s1001_s25 = sshll.u32 %s853_s28, 3  ;;  %s853_s28 = sphi %s995_s28, %s344_s28  }
  0x24   : >> { %p346_p12 = scmp.le.s32.totalorder %s1001_s25, %s971_s24  ;;  %s347_s1 = sadd.s32 7, %s1001_s25 }
  0x25   : >> { %p348_p13 = scmp.ge.s32.totalorder %s347_s1, %s968_s23 }
  0x27   : >> { %p349_p0 = pnand %p348_p13, %p346_p12 }
  0x28   : >> { %s381_s15 = sadd.s32 (!%p349_p0), 2, %s1001_s25  ;;  %s368_s20 = sadd.s32 (!%p349_p0), 1, %s1001_s25 }
  0x29   : >> { %352 = sbr.rel (%p349_p0) target bundleno = 190 (0xbe), region = 51  ;;  %s394_s21 = sadd.s32 (!%p349_p0), 3, %s1001_s25 }
  0x2a   : >> { %s407_s27 = sadd.s32 (!%p349_p0), 4, %s1001_s25  ;;  %s420_s29 = sadd.s32 (!%p349_p0), 5, %s1001_s25 }
  0x2b   : >> { %s433_s8 = sadd.s32 (!%p349_p0), 6, %s1001_s25  ;;  %s353_s13 = scalar_lea.vmem (!%p349_p0), %s977_s30, %s1001_s25 }
  0x2e   : >> { %v356_v3 = vstv %s1001_s25  ;;  %v858_v4 = vmov 0   ;;  %v382_v5 = vstv %s381_s15  ;;  %v369_v6 = vstv %s368_s20  ;;  %v354_v20 = vld [vmem:[%s353_s13] sm:$0xff] }
  0x2f   : >> { %736 = vset.pattern.permute.xlu0 %v858_v4  ;;  %737 = vset.pattern.permute.xlu1 %v858_v4  ;;  %vm357_vm0 = vcmp.le.s32.totalorder %v985_v1, %v356_v3  ;;  %vm358_vm1 = vcmp.le.s32.totalorder %v356_v3, %v992_v2  ;;  %vm383_vm3 = vcmp.le.s32.totalorder %v985_v1, %v382_v5  ;;  %v395_v8 = vstv %s394_s21  ;;  %v355_v25 = vld [vmem:[#allocation2] sm:$0xff] }
  0x30   : >> { %vm359_vm2 = vmand %vm357_vm0, %vm358_vm1  ;;  %vm384_vm4 = vcmp.le.s32.totalorder %v382_v5, %v992_v2  ;;  %738 = vset.pattern.permute.xlu2 %v858_v4  ;;  %vm370_vm6 = vcmp.le.s32.totalorder %v985_v1, %v369_v6  ;;  %vm371_vm7 = vcmp.le.s32.totalorder %v369_v6, %v992_v2  ;;  %vm396_vm8 = vcmp.le.s32.totalorder %v985_v1, %v395_v8 }
  0x31   : >> { %v360_v7 = vsel %vm359_vm2, 1, %v858_v4  ;;  %vm385_vm5 = vmand %vm383_vm3, %vm384_vm4  ;;  %vm397_vm9 = vcmp.le.s32.totalorder %v395_v8, %v992_v2  ;;  %v408_v10 = vstv %s407_s27  ;;  %v421_v11 = vstv %s420_s29 }
  0x32   : >> { %362 = vperm.xlu0 %736, %v360_v7   ;;  %v386_v9 = vsel %vm385_vm5, 1, %v858_v4  ;;  %vm372_vm10 = vmand %vm370_vm6, %vm371_vm7  ;;  %vm409_vm11 = vcmp.le.s32.totalorder %v985_v1, %v408_v10  ;;  %vm410_vm12 = vcmp.le.s32.totalorder %v408_v10, %v992_v2  ;;  %v434_v12 = vstv %s433_s8 }
  0x33   : >> { %388 = vperm.xlu1 %737, %v386_v9   ;;  %vm398_vm13 = vmand %vm396_vm8, %vm397_vm9  ;;  %v446_v13 = vstv %s347_s1  ;;  %v373_v14 = vsel %vm372_vm10, 1, %v858_v4  ;;  %vm422_vm15 = vcmp.le.s32.totalorder %v985_v1, %v421_v11  ;;  %vm423_vm0 = vcmp.le.s32.totalorder %v421_v11, %v992_v2 }
  0x34   : >> { %vm411_vm14 = vmand %vm409_vm11, %vm410_vm12  ;;  %v399_v16 = vsel %vm398_vm13, 1, %v858_v4  ;;  %vm435_vm1 = vcmp.le.s32.totalorder %v985_v1, %v434_v12  ;;  %vm436_vm2 = vcmp.le.s32.totalorder %v434_v12, %v992_v2  ;;  %vm447_vm3 = vcmp.le.s32.totalorder %v985_v1, %v446_v13 }
  0x35   : >> { %v412_v15 = vsel %vm411_vm14, 1, %v858_v4  ;;  %vm448_vm4 = vcmp.le.s32.totalorder %v446_v13, %v992_v2  ;;  %vm424_vm5 = vmand %vm422_vm15, %vm423_vm0  ;;  %v365_v24 = vperm.slane %v354_v20, 0  ;;  %v378_v27 = vperm.slane %v354_v20, 1 }
  0x36   : >> { %414 = vperm.xlu2 %738, %v412_v15   ;;  %vm437_vm6 = vmand %vm435_vm1, %vm436_vm2  ;;  %v425_v17 = vsel %vm424_vm5, 1, %v858_v4  ;;  %v391_v28 = vperm.slane %v354_v20, 2  ;;  %v404_v33 = vperm.slane %v354_v20, 3  ;;  %v417_v35 = vperm.slane %v354_v20, 4 }
  0x37   : >> { %vm449_vm7 = vmand %vm447_vm3, %vm448_vm4  ;;  %v438_v18 = vsel %vm437_vm6, 1, %v858_v4  ;;  %v430_v39 = vperm.slane %v354_v20, 5  ;;  %v443_v44 = vperm.slane %v354_v20, 6  ;;  %v455_v48 = vperm.slane %v354_v20, 7 }
  0x38   : >> { %v450_v19 = vsel %vm449_vm7, 1, %v858_v4 }
  0x3a   : >> { %375 = vperm.xlu0 %736, %v373_v14  }
  0x3b   : >> { %401 = vperm.xlu1 %737, %v399_v16  }
  0x3e   : >> { %427 = vperm.xlu2 %738, %v425_v17  }
  0x42   : >> { %440 = vperm.xlu0 %736, %v438_v18  }
  0x43   : >> { %452 = vperm.xlu1 %737, %v450_v19  }
  0x90   : >> { %v415_v23 = vpop.permute.xlu2 %414 }
  0x91   : >> { %vm416_vm12 = vcmp.eq.s32.totalorder %v415_v23, 1 }
  0x92   : >> { %v418_v42 = vsel %vm416_vm12, %v417_v35, -3.4028235e+38 }
  0x98   : >> { %v428_v37 = vpop.permute.xlu2 %427 }
  0x99   : >> { %vm429_vm13 = vcmp.eq.s32.totalorder %v428_v37, 1 }
  0x9a   : >> { %v431_v47 = vsel %vm429_vm13, %v430_v39, -3.4028235e+38 }
  0xa4   : >> { %v363_v21 = vpop.permute.xlu0 %362 }
  0xa5   : >> { %v389_v22 = vpop.permute.xlu1 %388  ;;  %vm364_vm8 = vcmp.eq.s32.totalorder %v363_v21, 1 }
  0xa6   : >> { %v366_v26 = vsel %vm364_vm8, %v365_v24, -3.4028235e+38  ;;  %vm390_vm9 = vcmp.eq.s32.totalorder %v389_v22, 1 }
  0xa7   : >> { %v367_v30 = vmax.f32 %v355_v25, %v366_v26  ;;  %v392_v36 = vsel %vm390_vm9, %v391_v28, -3.4028235e+38 }
  0xac   : >> { %v376_v29 = vpop.permute.xlu0 %375 }
  0xad   : >> { %vm377_vm10 = vcmp.eq.s32.totalorder %v376_v29, 1  ;;  %v402_v31 = vpop.permute.xlu1 %401 }
  0xae   : >> { %v379_v32 = vsel %vm377_vm10, %v378_v27, -3.4028235e+38  ;;  %vm403_vm11 = vcmp.eq.s32.totalorder %v402_v31, 1 }
  0xaf   : >> { %v380_v34 = vmax.f32 %v367_v30, %v379_v32  ;;  %v405_v40 = vsel %vm403_vm11, %v404_v33, -3.4028235e+38 }
  0xb1   : >> { %v393_v38 = vmax.f32 %v380_v34, %v392_v36 }
  0xb3   : >> { %v406_v41 = vmax.f32 %v393_v38, %v405_v40 }
  0xb4   : >> { %v441_v43 = vpop.permute.xlu0 %440 }
  0xb5   : >> { %v419_v45 = vmax.f32 %v406_v41, %v418_v42  ;;  %vm442_vm14 = vcmp.eq.s32.totalorder %v441_v43, 1  ;;  %v453_v46 = vpop.permute.xlu1 %452 }
  0xb6   : >> { %vm454_vm15 = vcmp.eq.s32.totalorder %v453_v46, 1  ;;  %v444_v50 = vsel %vm442_vm14, %v443_v44, -3.4028235e+38 }
  0xb7   : >> { %v432_v49 = vmax.f32 %v419_v45, %v431_v47  ;;  %v456_v52 = vsel %vm454_vm15, %v455_v48, -3.4028235e+38 }
  0xb9   : >> { %v445_v51 = vmax.f32 %v432_v49, %v444_v50 }
  0xbb   : >> { %v457_v53 = vmax.f32 %v445_v51, %v456_v52 }
  0xbd   : >> { %458 = vst [vmem:[#allocation2] sm:$0xff] %v457_v53 }
  0xbe PF: >> { %s344_s28 = sadd.s32 1, %s853_s28  }
  0xbf   : >> { %p341_p1 = scmp.ge.s32.totalorder %s344_s28, 2  }
  0xc0   : > { %v462_v54 = vld [vmem:[%s990_s0 + $0x10] sm:$0xff] (%p341_p1)  ;;  %v460_v55 = vld [vmem:[%s990_s0] sm:$0xff] (%p341_p1)  ;;  %v859_v56 = vmov (%p341_p1), 0   ;;  %v463_v57 = vld [vmem:[%s990_s0 + $0x18] sm:$0xff] (%p341_p1)  ;;  %s663_s23 = sshll.u32 (%p341_p1), %s841_s11, 3  ;;  %s513_s18 = sshll.u32 (%p341_p1), %s308_s26, 4  ;;  %s514_s18 = int_to_ptr.vmem [resolvable:$true] %s513_s18 }
  0xc1   : > { %343 = sbr.rel (!%p341_p1) target bundleno = 35 (0x23), region = 99  ;;  %740 = vset.pattern.permute.xlu1 (%p341_p1), %v859_v56  ;;  %739 = vset.pattern.permute.xlu0 (%p341_p1), %v859_v56  ;;  %v461_v58 = vld [vmem:[%s990_s0 + $0x8] sm:$0xff] (%p341_p1)  ;;  %v459_v61 = vld [vmem:[%s1093_s6] sm:$0xf] (%p341_p1)  ;;  %s511_s30 = scalar_lea.hbm (%p341_p1), %s1094_s7, %s663_s23 }
  0xc2   : > { %482 = vperm.xlu1 (%p341_p1), %740, %v462_v54   ;;  %466 = vperm.xlu0 (%p341_p1), %739, %v460_v55   ;;  %v469_v62 = vperm.slane (%p341_p1), %v459_v61, 0  ;;  %v477_v63 = vperm.slane (%p341_p1), %v459_v61, 1  ;;  %v485_v0 = vperm.slane (%p341_p1), %v459_v61, 2  ;;  %v493_v3 = vperm.slane (%p341_p1), %v459_v61, 3  ;;  %s515_s28 = sshll.u32 (%p341_p1), %s511_s30, 4  ;;  %s1106_s11 = sand.u32 (%p341_p1), 1, %s833_s10   ;;  %s516_s28 = int_to_ptr.hbm [resolvable:$true] %s515_s28 }
  0xc3   : > { %s500_s25 = scalar_lea.sflag (%p341_p1), [#allocation7], %s1106_s11  ;;  %s779_s1 = sshra.s32 (%p341_p1), %s516_s28, 4  ;;  %s780_s1 = int_to_ptr.hbm [resolvable:$true] %s779_s1 }
  0xc4   : > { %v496_v10 = vld [vmem:[#allocation2] sm:$0xff] (%p341_p1)  ;;  %s781_s15 = scalar_lea.hbm (%p341_p1), %s780_s1, 8  ;;  %s785_s27 = scalar_lea.hbm (%p341_p1), %s1094_s7, 16 }
  0xc5   : > { %p782_p2 = scmp.ne.s32.totalorder (%p341_p1), %s780_s1, %s781_s15  ;;  %p786_p6 = scmp.lt.s32.totalorder (%p341_p1), %s780_s1, %s1094_s7 }
  0xc6   : > { %p787_p7 = scmp.lt.s32.totalorder %s785_s27, %s781_s15 }
  0xc7   : > { %p783_p3 = pnand %p782_p2, %p946_p4 }
  0xc8   : > { %p788_p9 = por %p787_p7, %p786_p6 }
  0xc9   : > { %p784_p5 = pneg %p783_p3 }
  0xca   : > { %490 = vperm.xlu1 %740, %v463_v57   ;;  %474 = vperm.xlu0 %739, %v461_v58  }
  0xcb   : > { %p789_p10 = pnand %p788_p9, %p784_p5 }
 0x134   : > { %v483_v59 = vpop.permute.xlu1 %482  ;;  %v467_v60 = vpop.permute.xlu0 %466 }
 0x135   : > { %v470_v2 = vmul.f32 %v469_v62, %v467_v60  ;;  %v486_v6 = vmul.f32 %v485_v0, %v483_v59 }
 0x13c   : > { %v475_v1 = vpop.permute.xlu0 %474  ;;  %v491_v5 = vpop.permute.xlu1 %490 }
 0x13d   : > { %v478_v4 = vmul.f32 %v477_v63, %v475_v1  ;;  %v494_v8 = vmul.f32 %v493_v3, %v491_v5 }
 0x13f   : > { %v479_v7 = vadd.f32 %v478_v4, %v470_v2 }
 0x141   : > { %v487_v9 = vadd.f32 %v486_v6, %v479_v7 }
 0x143   : > { %v495_v11 = vadd.f32 %v494_v8, %v487_v9 }
 0x145   : > { %v497_v12 = vadd.f32 %v496_v10, %v495_v11 }
 0x147   : > { %498 = vst [vmem:[%s308_s26] sm:$0xff] %v497_v12 }
 0x148   : > { %792 = shalt.err (!%p789_p10)
}
 0x149   : > { %668 = dma.vmem_to_hbm [thread:$0]  (%p946_p4), %s514_s18, 128, %s516_s28, %s500_s25  }
 0x14a PF: > { %p674_p11 = scmp.ge.s32.totalorder %s849_s12, 2  ;;  %s527_s22 = sand.u32 1, %s829_s9  }
 0x14b   : > { %s528_s26 = scalar_lea.sflag [#allocation7], %s527_s22 }
 0x14c   : > { %p671_p12 = pnand %p674_p11, %p953_p8 }
 0x14e   : > { %p672_p13 = pneg %p671_p12 }
 0x150   : > { %824 = dma.done.wait (%p672_p13), %s528_s26, 128  }
 0x151   : > { %826 = vsyncadd (%p672_p13), %s528_s26, 4294967168  ;;  %s33_s12 = sadd.s32 1, %s849_s12   ;;  %s1107_s13 = sld [smem:[#allocation10_spill]] }
 0x152   : > { %p30_p0 = scmp.ge.s32.totalorder %s33_s12, 4   ;;  %s1108_s0 = sld [smem:[#allocation13_spill]] }
 0x153   : > { %s1109_s11 = sld [smem:[#allocation11_spill]]  ;;  %s1111_s9 = smov %s833_s10 }
 0x154   : > { %s1110_s1 = sld [smem:[#allocation12_spill]]  ;;  %32 = sbr.rel (!%p30_p0) target bundleno = 11 (0xb), region = 110 }
 0x157   : > { %s1112_s10 = smov %s1107_s13 }
 0x159   :  { %534 = vsyncpa [#allocation7], 1 }
 0x15a   :  { %536 = vsyncpa [#allocation7 + $0x1], 1 }

</bundles_post_ra>
